<compile_context>
chip_gen: v5e
topology: v5e:2x2
jax: 0.10.0
libtpu: 0.0.40
codegen_flags: <defaults>
</compile_context>

<pallas_src>
import jax
import jax.numpy as jnp
from jax.experimental import pallas as pl
from jax.experimental.pallas import tpu as pltpu


# --------------------------------------------------------------------------- #
# Kernel
# --------------------------------------------------------------------------- #
def _mlp_kernel(x_ref, w_ref, b_ref, o_ref):
    k = pl.program_id(2)

    # The output tile's block index is (i, j) for every k, so o_ref stays
    # resident in VMEM across the whole K reduction: use it as the f32
    # accumulator directly.
    @pl.when(k == 0)
    def _():
        o_ref[...] = jnp.zeros_like(o_ref)

    o_ref[...] += jnp.dot(
        x_ref[...], w_ref[...], preferred_element_type=jnp.float32
    )

    # Epilogue only on the final K step: bias add + ReLU in place.
    @pl.when(k == pl.num_programs(2) - 1)
    def _():
        o_ref[...] = jnp.maximum(o_ref[...] + b_ref[...], 0.0).astype(o_ref.dtype)


# --------------------------------------------------------------------------- #
# Tiling helpers
# --------------------------------------------------------------------------- #
def _round_up(v, m):
    return (v + m - 1) // m * m


def _choose_tile(dim, max_tile, gran, max_pad_frac=0.125):
    """Pick (tile, padded_dim): tile is a multiple of `gran`, <= ~max_tile,
    padded_dim a multiple of tile, keeping zero-padding overhead small."""
    base = _round_up(dim, gran)
    t = min(_round_up(max_tile, gran), base)
    while t > gran:
        padded = _round_up(dim, t)
        if padded - base <= base * max_pad_frac:
            return t, padded
        t -= gran
    return gran, base


def _chip_config():
    """Generation-aware tile ceilings and VMEM limits."""
    kind = ""
    try:
        kind = jax.devices()[0].device_kind.lower()
    except Exception:
        pass
    if "v7" in kind:
        # 64 MiB physical VMEM per TC: budget conservatively; 2 TensorCores.
        return dict(tm=1024, tn=1024, tk=512,
                    vmem_limit=48 * 1024 * 1024, two_tc=True)
    if "v6" in kind:
        return dict(tm=1024, tn=1024, tk=512,
                    vmem_limit=64 * 1024 * 1024, two_tc=False)
    if "v5" in kind:
        # AI = 256 FLOP/byte > v5e ridge (~240); fits 16 MiB default scoped VMEM.
        return dict(tm=512, tn=512, tk=512, vmem_limit=None, two_tc=False)
    # Unknown chip: conservative.
    return dict(tm=512, tn=512, tk=512, vmem_limit=None, two_tc=False)


# --------------------------------------------------------------------------- #
# Forward (hot path) — expects pre-padded bf16 weight / f32 bias.
# --------------------------------------------------------------------------- #
def _mlp_forward_padded(x, w_p, b_p, in_features, out_features, tk, tn, cfg):
    B = x.shape[0]
    Kp, Np = w_p.shape

    # Small-batch: tm = whole (padded) batch => weight streamed from HBM once.
    tm, Mp = _choose_tile(B, cfg["tm"], 16)

    # v7x megacore: keep the parallel (i, j) grid at >= 2 blocks when we can.
    if cfg["two_tc"] and (Mp // tm) * (Np // tn) < 2 and Np >= 256:
        t = (Np // 2) // 128 * 128
        while t >= 128 and Np % t:
            t -= 128
        if t >= 128:
            tn = t

    # Per-call activation pad/cast only (weight prep was hoisted out).
    x_p = jnp.zeros((Mp, Kp), jnp.bfloat16)
    x_p = x_p.at[:B, :in_features].set(x.astype(jnp.bfloat16))

    gm, gn, gk = Mp // tm, Np // tn, Kp // tk

    cost = pl.CostEstimate(
        flops=2 * Mp * Kp * Np,
        transcendentals=0,
        bytes_accessed=(
            x_p.size * 2 * gn       # x re-streamed once per N tile column
            + w_p.size * 2 * gm     # w re-streamed once per M tile row
            + b_p.size * 4 * gm
            + Mp * Np * 4           # output writeback
        ),
    )

    out_p = pl.pallas_call(
        _mlp_kernel,
        out_shape=jax.ShapeDtypeStruct((Mp, Np), jnp.float32),
        grid_spec=pltpu.PrefetchScalarGridSpec(
            num_scalar_prefetch=0,
            grid=(gm, gn, gk),
            in_specs=[
                pl.BlockSpec((tm, tk), lambda i, j, k: (i, k)),   # x tile
                pl.BlockSpec((tk, tn), lambda i, j, k: (k, j)),   # w tile
                pl.BlockSpec((1, tn), lambda i, j, k: (0, j)),    # bias tile
            ],
            out_specs=pl.BlockSpec((tm, tn), lambda i, j, k: (i, j)),
        ),
        compiler_params=pltpu.CompilerParams(
            dimension_semantics=("parallel", "parallel", "arbitrary"),
            vmem_limit_bytes=cfg["vmem_limit"],
        ),
        cost_estimate=cost,
    )(x_p, w_p, b_p)

    return out_p[:B, :out_features]


# --------------------------------------------------------------------------- #
# Module-equivalent wrapper (does the one-time weight pad/cast at construction)
# --------------------------------------------------------------------------- #
def xavier_uniform(key, fan_in, fan_out, dtype=jnp.float32):
    # Matches torch.nn.init.xavier_uniform_ (gain=1): U(-a, a), a = sqrt(6/(fi+fo))
    a = (6.0 / (fan_in + fan_out)) ** 0.5
    return jax.random.uniform(key, (fan_in, fan_out), dtype=dtype, minval=-a, maxval=a)


class PallasMLP:
    """Pallas-TPU equivalent of the torch MLP module: y = relu(Linear(x))."""

    def __init__(self, in_features, out_features, *, key=None, weight=None, bias=None):
        self.in_features = in_features
        self.out_features = out_features
        self.cfg = _chip_config()

        # K / N tiling only depends on the feature dims and the chip, so the
        # weight can be padded + cast exactly once here (out of the hot path).
        self.tk, self.Kp = _choose_tile(in_features, self.cfg["tk"], 128)
        self.tn, self.Np = _choose_tile(out_features, self.cfg["tn"], 128)

        if weight is None:
            assert key is not None, "need a PRNG key or an explicit weight"
            weight = xavier_uniform(key, in_features, out_features)
        if bias is None:
            bias = jnp.zeros((out_features,), jnp.float32)
        self.weight = weight          # (Fin, Fout), f32, for reference checks
        self.bias = bias

        w_p = jnp.zeros((self.Kp, self.Np), jnp.bfloat16)
        self.w_p = w_p.at[:in_features, :out_features].set(weight.astype(jnp.bfloat16))
        b_p = jnp.zeros((1, self.Np), jnp.float32)
        self.b_p = b_p.at[0, :out_features].set(bias.astype(jnp.float32))

    def __call__(self, x):
        return _mlp_forward_padded(
            x, self.w_p, self.b_p, self.in_features, self.out_features,
            self.tk, self.tn, self.cfg,
        )


# --------------------------------------------------------------------------- #
# Demo / self-test
# --------------------------------------------------------------------------- #
if __name__ == "__main__":
    key = jax.random.PRNGKey(0)
    k_x, k_w = jax.random.split(key)

    batch = 8
    in_features = 32
    out_features = 64

    x = jax.random.normal(k_x, (batch, in_features), dtype=jnp.float32)

    mlp = PallasMLP(in_features, out_features, key=k_w)

    out = mlp(x)
    jax.block_until_ready(out)
    assert out.shape == (batch, out_features)
    assert out.dtype == jnp.float32

    # Reference with the same bf16-input / f32-accumulate numerics as the kernel.
    ref_bf16 = jnp.maximum(
        jnp.dot(x.astype(jnp.bfloat16), mlp.weight.astype(jnp.bfloat16),
                preferred_element_type=jnp.float32) + mlp.bias,
        0.0,
    )
    assert jnp.allclose(out, ref_bf16, atol=1e-4, rtol=1e-4)

    # Sanity check against the full-f32 reference (loose tol: bf16 matmul inputs).
    ref_f32 = jnp.maximum(x @ mlp.weight + mlp.bias, 0.0)
    assert jnp.allclose(out, ref_f32, atol=3e-2, rtol=3e-2)

    print("KERNEL_OK")
</pallas_src>

<mosaic_0001>
module attributes {stable_mosaic.version = 11 : i64} {
  func.func @_mlp_kernel(%arg0: i32, %arg1: i32, %arg2: i32, %arg3: memref<16x128xbf16, #tpu.memory_space<vmem>>, %arg4: memref<128x128xbf16, #tpu.memory_space<vmem>>, %arg5: memref<1x128xf32, #tpu.memory_space<vmem>>, %arg6: memref<16x128xf32, #tpu.memory_space<vmem>>) attributes {dimension_semantics = [#tpu.dimension_semantics<parallel>, #tpu.dimension_semantics<parallel>, #tpu.dimension_semantics<arbitrary>], iteration_bounds = array<i64: 1, 1, 1>, scalar_prefetch = 0 : i64, scratch_operands = 0 : i64, tpu.core_type = #tpu.core_type<tc>, window_params = [{transform_indices = @transform_0, window_bounds = array<i64: 16, 128>}, {transform_indices = @transform_1, window_bounds = array<i64: 128, 128>}, {transform_indices = @transform_2, window_bounds = array<i64: 1, 128>}, {transform_indices = @transform_3, window_bounds = array<i64: 16, 128>}]} {
    %c0_i32 = arith.constant 0 : i32
    %0 = arith.cmpi eq, %arg2, %c0_i32 : i32
    %1 = arith.extui %0 : i1 to i32
    %c0_i32_0 = arith.constant 0 : i32
    %2 = arith.cmpi ne, %1, %c0_i32_0 : i32
    scf.if %2 {
      %cst_10 = arith.constant 0.000000e+00 : f32
      %12 = vector.broadcast %cst_10 : f32 to vector<16x128xf32>
      %c0_11 = arith.constant 0 : index
      %c0_12 = arith.constant 0 : index
      %13 = vector.load %arg6[%c0_11, %c0_12] : memref<16x128xf32, #tpu.memory_space<vmem>>, vector<16x128xf32>
      tpu.vector_store %arg6[%c0_11, %c0_12], %12 {strides = array<i32>} : memref<16x128xf32, #tpu.memory_space<vmem>>, vector<16x128xf32>,
    } else {
    }
    %c0 = arith.constant 0 : index
    %c0_1 = arith.constant 0 : index
    %3 = vector.load %arg6[%c0, %c0_1] : memref<16x128xf32, #tpu.memory_space<vmem>>, vector<16x128xf32>
    %c0_2 = arith.constant 0 : index
    %c0_3 = arith.constant 0 : index
    %4 = vector.load %arg3[%c0_2, %c0_3] : memref<16x128xbf16, #tpu.memory_space<vmem>>, vector<16x128xbf16>
    %c0_4 = arith.constant 0 : index
    %c0_5 = arith.constant 0 : index
    %5 = vector.load %arg4[%c0_4, %c0_5] : memref<128x128xbf16, #tpu.memory_space<vmem>>, vector<128x128xbf16>
    %cst = arith.constant dense<0.000000e+00> : vector<16x128xf32>
    %6 = tpu.matmul %4, %5, %cst {dimension_numbers = #tpu.dot_dimension_numbers<[1], [0], [0], [1], [0, 0, 1, 1], [], []>} : vector<16x128xbf16>, vector<128x128xbf16>, vector<16x128xf32> -> vector<16x128xf32>
    %7 = arith.addf %3, %6 : vector<16x128xf32>
    %c0_6 = arith.constant 0 : index
    %c0_7 = arith.constant 0 : index
    %8 = vector.load %arg6[%c0_6, %c0_7] : memref<16x128xf32, #tpu.memory_space<vmem>>, vector<16x128xf32>
    tpu.vector_store %arg6[%c0_6, %c0_7], %7 {strides = array<i32>} : memref<16x128xf32, #tpu.memory_space<vmem>>, vector<16x128xf32>,
    %c0_i32_8 = arith.constant 0 : i32
    %9 = arith.cmpi eq, %arg2, %c0_i32_8 : i32
    %10 = arith.extui %9 : i1 to i32
    %c0_i32_9 = arith.constant 0 : i32
    %11 = arith.cmpi ne, %10, %c0_i32_9 : i32
    scf.if %11 {
      %c0_10 = arith.constant 0 : index
      %c0_11 = arith.constant 0 : index
      %12 = vector.load %arg6[%c0_10, %c0_11] : memref<16x128xf32, #tpu.memory_space<vmem>>, vector<16x128xf32>
      %c0_12 = arith.constant 0 : index
      %c0_13 = arith.constant 0 : index
      %13 = vector.load %arg5[%c0_12, %c0_13] : memref<1x128xf32, #tpu.memory_space<vmem>>, vector<1x128xf32>
      %14 = vector.broadcast %13 : vector<1x128xf32> to vector<16x128xf32>
      %15 = arith.addf %12, %14 : vector<16x128xf32>
      %cst_14 = arith.constant 0.000000e+00 : f32
      %16 = vector.broadcast %cst_14 : f32 to vector<16x128xf32>
      %17 = arith.maximumf %15, %16 : vector<16x128xf32>
      %c0_15 = arith.constant 0 : index
      %c0_16 = arith.constant 0 : index
      %18 = vector.load %arg6[%c0_15, %c0_16] : memref<16x128xf32, #tpu.memory_space<vmem>>, vector<16x128xf32>
      tpu.vector_store %arg6[%c0_15, %c0_16], %17 {strides = array<i32>} : memref<16x128xf32, #tpu.memory_space<vmem>>, vector<16x128xf32>,
    } else {
    }
    return
  }
  func.func @transform_0(%arg0: i32, %arg1: i32, %arg2: i32) -> (i32, i32) {
    %c0_i32 = arith.constant 0 : i32
    return %arg0, %arg2 : i32, i32
  }
  func.func @transform_1(%arg0: i32, %arg1: i32, %arg2: i32) -> (i32, i32) {
    %c0_i32 = arith.constant 0 : i32
    return %arg2, %arg1 : i32, i32
  }
  func.func @transform_2(%arg0: i32, %arg1: i32, %arg2: i32) -> (i32, i32) {
    %c0_i32 = arith.constant 0 : i32
    %c0_i32_0 = arith.constant 0 : i32
    return %c0_i32, %arg1 : i32, i32
  }
  func.func @transform_3(%arg0: i32, %arg1: i32, %arg2: i32) -> (i32, i32) {
    %c0_i32 = arith.constant 0 : i32
    return %arg0, %arg1 : i32, i32
  }
}

</mosaic_0001>

<bundles_post_ra>
// kernel: tpu_custom_call.1
= control target key start
LH: loop header
LB: loop body
LE: loop exit
PB: predicated region body
PF: predicated region fallthrough
CT: control target
= control target key end

     0   :  { %8 = vsyncpa [#allocation3], 0  ;;  %s351_s0 = inlined_call_operand.hbm [shape: bf16[16,128], index: 0, kind: input, shape index: {}]   ;;  %s352_s1 = inlined_call_operand.hbm [shape: bf16[128,128], index: 1, kind: input, shape index: {}]   ;;  %s353_s2 = inlined_call_operand.vmem [shape: f32[1,128], index: 2, kind: input, shape index: {}]   ;;  %s354_s3 = inlined_call_operand.hbm [shape: f32[16,128], index: 3, kind: output, shape index: {}]  }
   0x1   :  { %9 = vsyncpa [#allocation6], 0 }
   0x2   :  { %10 = vsyncpa [#allocation4], 0  ;;  %s15_s14 = sshll.u32 %s351_s0, 4  ;;  %s312_s15 = smov [#allocation2]   ;;  %s16_s14 = int_to_ptr.hbm [resolvable:$true] %s15_s14 }
   0x3   :  { %s17_s16 = sshll.u32 %s312_s15, 4  ;;  %s28_s19 = sshll.u32 %s352_s1, 4  ;;  %s18_s16 = int_to_ptr.vmem [resolvable:$true] %s17_s16  ;;  %s29_s19 = int_to_ptr.hbm [resolvable:$true] %s28_s19 }
   0x4   :  { %s313_s20 = smov 64   ;;  %s314_s21 = smov 4  }
   0x5   :  { %23 = dma.hbm_to_vmem [thread:$0]  %s16_s14, 128, %s18_s16, [#allocation3], %s313_s20, %s313_s20, %s314_s21  }
   0x6   :  { %s315_s22 = smov [#allocation5]  }
   0x7   :  { %s30_s23 = sshll.u32 %s315_s22, 4  ;;  %s31_s23 = int_to_ptr.vmem [resolvable:$true] %s30_s23 }
   0x8   :  { %36 = dma.hbm_to_vmem [thread:$0]  %s29_s19, 1024, %s31_s23, [#allocation6], %s313_s20, %s313_s20, %s314_s21  }
   0x9   :  { %306 = dma.done.wait [#allocation3], 128  }
   0xa   :  { %307 = vsyncadd [#allocation3], 4294967168 }
   0xb   :  { %308 = dma.done.wait [#allocation6], 1024  }
   0xc   :  { %309 = vsyncadd [#allocation6], 4294966272  ;;  %v224_v0 = vld [vmem:[#allocation5 + $0x38] sm:$0xff]  ;;  %v223_v1 = vld [vmem:[#allocation5 + $0x30] sm:$0xff]  ;;  %s316_s24 = smov [#allocation7]   ;;  %s166_s28 = sshll.u32 %s354_s3, 4  ;;  %s167_s28 = int_to_ptr.hbm [resolvable:$true] %s166_s28 }
   0xd   :  { %127 = vmatpush.bf16.msra.mxu0 %v224_v0  ;;  %v222_v2 = vld [vmem:[#allocation5 + $0x28] sm:$0xff]  ;;  %v221_v3 = vld [vmem:[#allocation5 + $0x20] sm:$0xff]  ;;  %v220_v4 = vld [vmem:[#allocation5 + $0x18] sm:$0xff]  ;;  %s164_s25 = sshll.u32 %s316_s24, 4  ;;  %s317_s29 = smov 128   ;;  %s165_s25 = int_to_ptr.vmem [resolvable:$true] %s164_s25 }
   0xe   :  { %v219_v5 = vld [vmem:[#allocation5 + $0x10] sm:$0xff]  ;;  %v218_v6 = vld [vmem:[#allocation5 + $0x8] sm:$0xff]  ;;  %v217_v7 = vld [vmem:[#allocation5] sm:$0xff]  ;;  %s318_s30 = smov 8  }
   0xf   :  { %v216_v8 = vld [vmem:[#allocation2] sm:$0xff] }
  0x10   :  { %v233_v9 = vld [vmem:[%s353_s2] ss:$0 sm:$0xff] }
  0x11   :  { %128 = vmatpush.bf16.msra.mxu0 %v223_v1 }
  0x15   :  { %129 = vmatpush.bf16.msra.mxu0 %v222_v2 }
  0x19   :  { %130 = vmatpush.bf16.msra.mxu0 %v221_v3 }
  0x1d   :  { %131 = vmatpush.bf16.msra.mxu0 %v220_v4 }
  0x21   :  { %132 = vmatpush.bf16.msra.mxu0 %v219_v5 }
  0x25   :  { %133 = vmatpush.bf16.msra.mxu0 %v218_v6 }
  0x29   :  { %134 = vmatpush.bf16.msra.mxu0 %v217_v7 }
  0x2c   :  { %135 = vmatmul.bf16.vlgmr.msra.gmra.mxu0 %v216_v8 }
  0xa9   :  { %v136_v10 = vpop.f32.mrf.mxu0 }
  0xaa   :  { %v154_v11 = vadd.f32 %v233_v9, %v136_v10 }
  0xac   :  { %v156_v12 = vmax.f32 %v154_v11, 0.0 }
  0xae   :  { %158 = vst [vmem:[#allocation7] sm:$0xff] %v156_v12 }
  0xb1   :  { %v138_v13 = vpop.f32.mrf.mxu0 }
  0xb2   :  { %v155_v14 = vadd.f32 %v233_v9, %v138_v13 }
  0xb4   :  { %v157_v15 = vmax.f32 %v155_v14, 0.0 }
  0xb6   :  { %159 = vst [vmem:[#allocation7 + $0x8] sm:$0xff] %v157_v15 }
  0xb7   :  { %172 = dma.vmem_to_hbm [thread:$0]  %s165_s25, 256, %s167_s28, [#allocation4], %s317_s29, %s317_s29, %s318_s30  }
  0xb8   :  { %310 = dma.done.wait [#allocation4], 256  }
  0xb9   :  { %311 = vsyncadd [#allocation4], 4294967040 }
  0xba   :  { %177 = vsyncpa [#allocation3], 1 }
  0xbb   :  { %178 = vsyncpa [#allocation6], 1 }
  0xbc   :  { %179 = vsyncpa [#allocation4], 1 }

</bundles_post_ra>
